<compile_context>
chip_gen: v7x
topology: tpu7x:2x2x1
jax: 0.10.0
libtpu: 0.0.40
codegen_flags: <defaults>
</compile_context>

<pallas_src>
import functools

import jax
import jax.numpy as jnp
from jax.experimental import pallas as pl
from jax.experimental.pallas import tpu as pltpu

_EPS = 1e-8                     # matches torch.nn.CosineSimilarity default
_CHUNK_F32_BYTES = 256 * 1024   # target f32 bytes per operand per compute sub-chunk


def _round_up(x, m):
    return ((x + m - 1) // m) * m


def _chip_info():
    """Returns (is_multi_tc_chip, num_tensorcores) from the local device kind."""
    kind = ""
    try:
        kind = (jax.devices()[0].device_kind or "").lower()
    except Exception:
        pass
    is_v7 = "v7" in kind          # v7x: 2 TensorCores / chip, 64 MiB VMEM
    return is_v7, (2 if is_v7 else 1)


def _simsiam_kernel(s_ref, t_ref, o_ref, *, n_rows, row_tile, chunk,
                    steps_per_shard, unroll):
    shard = pl.program_id(0)
    step = pl.program_id(1)

    # The output block index depends only on `shard`, so o_ref stays resident in
    # VMEM across the whole "arbitrary" step axis: init once, accumulate, and the
    # single HBM writeback happens automatically at the end of the shard.
    @pl.when(step == 0)
    def _():
        o_ref[...] = jnp.zeros_like(o_ref)

    n_chunks = row_tile // chunk
    row0 = (shard * steps_per_shard + step) * row_tile
    eps2 = jnp.float32(_EPS * _EPS)

    def _cos_rows(s, t):
        s = s.astype(jnp.float32)
        t = t.astype(jnp.float32)
        dot = jnp.sum(s * t, axis=-1, keepdims=True)
        ss = jnp.sum(s * s, axis=-1, keepdims=True)
        tt = jnp.sum(t * t, axis=-1, keepdims=True)
        # dot / max(||s||*||t||, eps) == dot * rsqrt(max(ss*tt, eps^2)); rsqrt -> EUP.
        return dot * jax.lax.rsqrt(jnp.maximum(ss * tt, eps2))

    def _block_sum(masked):
        """(1, 1) f32 sum of cosine similarities over this block's valid rows."""
        def chunk_sum(chunk_row0, s, t):
            cos = _cos_rows(s, t)                                    # (chunk, 1)
            if masked:
                local = jax.lax.broadcasted_iota(jnp.int32, (chunk, 1), 0)
                valid = (row0 + chunk_row0 + local) < n_rows
                # Keep the select (NOT cos * mask): out-of-range rows hold garbage
                # that may evaluate to NaN/Inf.
                cos = jnp.where(valid, cos, 0.0)
            return jnp.sum(cos, keepdims=True)                       # (1, 1)

        if n_chunks == 1:
            return chunk_sum(0, s_ref[...], t_ref[...])

        def body(c, acc):
            r = pl.multiple_of(c * chunk, chunk)
            return acc + chunk_sum(r, s_ref[pl.ds(r, chunk), :],
                                   t_ref[pl.ds(r, chunk), :])

        return jax.lax.fori_loop(0, n_chunks, body,
                                 jnp.zeros((1, 1), jnp.float32), unroll=unroll)

    is_full = row0 + row_tile <= n_rows

    # Mask-free fast path for interior (full) blocks -- the common case.
    @pl.when(is_full)
    def _():
        o_ref[...] += jnp.broadcast_to(_block_sum(masked=False), o_ref.shape)

    # Tail block (or a clamped fully-out-of-range block on the last shard).
    @pl.when(jnp.logical_not(is_full))
    def _():
        o_ref[...] += jnp.broadcast_to(_block_sum(masked=True), o_ref.shape)


def simsiam_loss(source, target, *, row_tile=None, num_shards=None,
                 vmem_budget_bytes=None, row_cap=8192):
    """-mean(cosine_similarity(source, target, dim=-1)); returns an f32 scalar."""
    assert source.shape == target.shape
    d = source.shape[-1]
    # target.detach() is a no-op for a pure forward pass (no grads flow here).
    s2 = source.reshape(-1, d)
    t2 = target.reshape(-1, d)
    n = s2.shape[0]

    itemsize = jnp.dtype(source.dtype).itemsize
    sub = 8 * max(1, 4 // itemsize)      # sublane multiple (8 f32, 16 bf16, 32 int8)

    is_v7, n_cores = _chip_info()
    if num_shards is None:
        # One shard per TensorCore: 2 on v7x (CORE_PARALLEL), 1 on v5e/v6e so the
        # single-TC chips never stream a clamped, fully masked (i.e. wasted) block.
        num_shards = n_cores
    num_shards = max(1, int(num_shards))

    if vmem_budget_bytes is None:
        # Budget for the 2 inputs x 2 pipeline buffers (v7x has only 64 MiB VMEM).
        vmem_budget_bytes = (24 << 20) if is_v7 else (40 << 20)

    shard_rows = _round_up(pl.cdiv(n, num_shards), sub)

    # Compute sub-chunk: bounds the f32-upcast working set (~1-1.5 MiB of temps)
    # independent of how big the DMA tile is.
    chunk = (_CHUNK_F32_BYTES // max(1, d * 4)) // sub * sub
    chunk = max(sub, min(chunk, 2048, shard_rows))

    if row_tile is None:
        # 2 inputs x 2 pipeline buffers x row_tile x d x itemsize <= budget,
        # capped at a few thousand rows; multi-MiB blocks keep HBM BW >= ~85%.
        max_rows_budget = max(sub, vmem_budget_bytes // (4 * d * itemsize))
        row_tile = min(row_cap, max_rows_budget)
    else:
        row_tile = max(sub, (int(row_tile) // sub) * sub)
    chunk = min(chunk, row_tile)
    row_tile = max(chunk, (row_tile // chunk) * chunk)       # multiple of chunk
    row_tile = min(row_tile, _round_up(shard_rows, chunk))   # no oversized blocks
    n_chunks = row_tile // chunk
    unroll = True if n_chunks <= 16 else 8

    total_blocks = pl.cdiv(n, row_tile)
    steps_per_shard = pl.cdiv(total_blocks, num_shards)
    last_block = total_blocks - 1

    def in_index_map(sh, st):
        b = sh * steps_per_shard + st
        # Clamp fully out-of-range blocks (last shard only); masked in-kernel.
        return (jnp.minimum(b, last_block), 0)

    kernel = functools.partial(
        _simsiam_kernel, n_rows=n, row_tile=row_tile, chunk=chunk,
        steps_per_shard=steps_per_shard, unroll=unroll)

    # Scoped-VMEM limit: 4 pipelined input buffers at input dtype + f32 compute
    # temporaries for one chunk + lane-dense output block + headroom.
    tile_bytes = row_tile * d * itemsize
    chunk_f32_bytes = chunk * d * 4
    vmem_limit = 4 * tile_bytes + 8 * chunk_f32_bytes + (4 << 20)
    vmem_cap = (48 << 20) if is_v7 else (64 << 20)   # v5e/v6e: 128 MiB physical VMEM
    vmem_limit = int(max(16 << 20, min(vmem_limit, vmem_cap)))

    def _run(dim_sems):
        return pl.pallas_call(
            kernel,
            out_shape=jax.ShapeDtypeStruct((num_shards, 128), jnp.float32),
            grid_spec=pltpu.PrefetchScalarGridSpec(
                num_scalar_prefetch=0,
                grid=(num_shards, steps_per_shard),
                in_specs=[
                    pl.BlockSpec((row_tile, d), in_index_map),
                    pl.BlockSpec((row_tile, d), in_index_map),
                ],
                # Lane-dense per-shard accumulator block, resident across steps.
                out_specs=pl.BlockSpec((1, 128), lambda sh, st: (sh, 0)),
            ),
            compiler_params=pltpu.CompilerParams(
                dimension_semantics=dim_sems,
                vmem_limit_bytes=vmem_limit,
            ),
        )(s2, t2)

    if num_shards > 1:
        try:
            # Genuinely split the shard axis across the two TensorCores (v7x).
            partials = _run((pltpu.CORE_PARALLEL, pltpu.ARBITRARY))
        except Exception:
            # Fallback if core-parallel lowering is unavailable on this stack.
            partials = _run(("parallel", "arbitrary"))
    else:
        partials = _run(("arbitrary", "arbitrary"))

    # Every lane of a shard's output row carries the same partial sum; take lane 0.
    return -(jnp.sum(partials[:, 0]) / jnp.float32(n))


def _reference(source, target):
    s = source.astype(jnp.float32)
    t = target.astype(jnp.float32)
    dot = jnp.sum(s * t, axis=-1)
    denom = jnp.maximum(
        jnp.linalg.norm(s, axis=-1) * jnp.linalg.norm(t, axis=-1), _EPS)
    return -jnp.mean(dot / denom)


if __name__ == "__main__":
    key = jax.random.PRNGKey(0)
    k1, k2, k3, k4, k5, k6 = jax.random.split(key, 6)

    # 1) small shapes consistent with the module: arbitrary leading dims, features last
    source = jax.random.normal(k1, (2, 16, 128), dtype=jnp.float32)
    target = jax.random.normal(k2, (2, 16, 128), dtype=jnp.float32)
    loss = simsiam_loss(source, target)
    jax.block_until_ready(loss)
    ref = _reference(source, target)
    assert jnp.allclose(loss, ref, atol=1e-5, rtol=1e-5), (loss, ref)

    # 2) ragged row count + bf16 inputs kept in bf16 at the HBM boundary (tail mask)
    s_b = jax.random.normal(k3, (3, 7, 96), dtype=jnp.float32).astype(jnp.bfloat16)
    t_b = jax.random.normal(k4, (3, 7, 96), dtype=jnp.float32).astype(jnp.bfloat16)
    loss_b = simsiam_loss(s_b, t_b)
    jax.block_until_ready(loss_b)
    ref_b = _reference(s_b, t_b)
    assert jnp.allclose(loss_b, ref_b, atol=1e-4, rtol=1e-4), (loss_b, ref_b)

    # 3) tiny row count (exercises the clamped fully-out-of-range shard path on v7x)
    s_t = jax.random.normal(k1, (1, 8, 128), dtype=jnp.float32)
    t_t = jax.random.normal(k2, (1, 8, 128), dtype=jnp.float32)
    loss_t = simsiam_loss(s_t, t_t)
    jax.block_until_ready(loss_t)
    ref_t = _reference(s_t, t_t)
    assert jnp.allclose(loss_t, ref_t, atol=1e-5, rtol=1e-5), (loss_t, ref_t)

    # 4) streaming path: multiple grid steps, multiple compute chunks per block,
    #    masked tail block (explicit small row_tile keeps the test data small).
    s_m = jax.random.normal(k5, (2, 513, 256), dtype=jnp.float32)
    t_m = jax.random.normal(k6, (2, 513, 256), dtype=jnp.float32)
    loss_m = simsiam_loss(s_m, t_m, row_tile=512)
    jax.block_until_ready(loss_m)
    ref_m = _reference(s_m, t_m)
    assert jnp.allclose(loss_m, ref_m, atol=1e-5, rtol=1e-5), (loss_m, ref_m)

    print("KERNEL_OK")
</pallas_src>

<mosaic_0001>
module attributes {stable_mosaic.version = 11 : i64} {
  func.func @_simsiam_kernel(%arg0: i32, %arg1: i32, %arg2: memref<32x128xf32, #tpu.memory_space<vmem>>, %arg3: memref<32x128xf32, #tpu.memory_space<vmem>>, %arg4: memref<1x128xf32, #tpu.memory_space<vmem>>) attributes {dimension_semantics = [#tpu.dimension_semantics<arbitrary>, #tpu.dimension_semantics<arbitrary>], iteration_bounds = array<i64: 1, 1>, scalar_prefetch = 0 : i64, scratch_operands = 0 : i64, tpu.core_type = #tpu.core_type<tc>, window_params = [{transform_indices = @transform_0, window_bounds = array<i64: 32, 128>}, {transform_indices = @transform_1, window_bounds = array<i64: 32, 128>}, {transform_indices = @transform_2, window_bounds = array<i64: 1, 128>}]} {
    %c0_i32 = arith.constant 0 : i32
    %0 = arith.cmpi eq, %arg1, %c0_i32 : i32
    %1 = arith.extui %0 : i1 to i32
    %c0_i32_0 = arith.constant 0 : i32
    %2 = arith.cmpi ne, %1, %c0_i32_0 : i32
    scf.if %2 {
      %cst_6 = arith.constant 0.000000e+00 : f32
      %13 = vector.broadcast %cst_6 : f32 to vector<1x128xf32>
      %c0 = arith.constant 0 : index
      %c0_7 = arith.constant 0 : index
      %14 = vector.load %arg4[%c0, %c0_7] : memref<1x128xf32, #tpu.memory_space<vmem>>, vector<1x128xf32>
      tpu.vector_store %arg4[%c0, %c0_7], %13 {strides = array<i32>} : memref<1x128xf32, #tpu.memory_space<vmem>>, vector<1x128xf32>,
    } else {
    }
    %c1_i32 = arith.constant 1 : i32
    %3 = arith.muli %arg0, %c1_i32 : i32
    %4 = arith.addi %3, %arg1 : i32
    %c32_i32 = arith.constant 32 : i32
    %5 = arith.muli %4, %c32_i32 : i32
    %c32_i32_1 = arith.constant 32 : i32
    %6 = arith.addi %5, %c32_i32_1 : i32
    %c32_i32_2 = arith.constant 32 : i32
    %7 = arith.cmpi sle, %6, %c32_i32_2 : i32
    %8 = arith.extui %7 : i1 to i32
    %cst = arith.constant 1.000000e-16 : f32
    %c0_i32_3 = arith.constant 0 : i32
    %9 = arith.cmpi ne, %8, %c0_i32_3 : i32
    scf.if %9 {
      %c0 = arith.constant 0 : index
      %c0_6 = arith.constant 0 : index
      %13 = vector.load %arg4[%c0, %c0_6] : memref<1x128xf32, #tpu.memory_space<vmem>>, vector<1x128xf32>
      %c0_7 = arith.constant 0 : index
      %c0_8 = arith.constant 0 : index
      %14 = vector.load %arg2[%c0_7, %c0_8] : memref<32x128xf32, #tpu.memory_space<vmem>>, vector<32x128xf32>
      %c0_9 = arith.constant 0 : index
      %c0_10 = arith.constant 0 : index
      %15 = vector.load %arg3[%c0_9, %c0_10] : memref<32x128xf32, #tpu.memory_space<vmem>>, vector<32x128xf32>
      %16 = arith.mulf %14, %15 : vector<32x128xf32>
      %cst_11 = arith.constant dense<0.000000e+00> : vector<32xf32>
      %17 = vector.multi_reduction <add>, %16, %cst_11 [1] : vector<32x128xf32> to vector<32xf32>
      %18 = vector.shape_cast %17 : vector<32xf32> to vector<32x1xf32>
      %19 = arith.mulf %14, %14 : vector<32x128xf32>
      %cst_12 = arith.constant dense<0.000000e+00> : vector<32xf32>
      %20 = vector.multi_reduction <add>, %19, %cst_12 [1] : vector<32x128xf32> to vector<32xf32>
      %21 = vector.shape_cast %20 : vector<32xf32> to vector<32x1xf32>
      %22 = arith.mulf %15, %15 : vector<32x128xf32>
      %cst_13 = arith.constant dense<0.000000e+00> : vector<32xf32>
      %23 = vector.multi_reduction <add>, %22, %cst_13 [1] : vector<32x128xf32> to vector<32xf32>
      %24 = vector.shape_cast %23 : vector<32xf32> to vector<32x1xf32>
      %25 = arith.mulf %21, %24 : vector<32x1xf32>
      %26 = vector.broadcast %cst : f32 to vector<32x1xf32>
      %27 = arith.maximumf %25, %26 : vector<32x1xf32>
      %28 = math.rsqrt %27 : vector<32x1xf32>
      %29 = arith.mulf %18, %28 : vector<32x1xf32>
      %30 = vector.shape_cast %29 : vector<32x1xf32> to vector<1x32x1xf32>
      %cst_14 = arith.constant dense<0.000000e+00> : vector<1xf32>
      %31 = vector.multi_reduction <add>, %30, %cst_14 [1, 2] : vector<1x32x1xf32> to vector<1xf32>
      %32 = vector.shape_cast %31 : vector<1xf32> to vector<1x1x1xf32>
      %33 = vector.extract %32[0, 0, 0] : f32 from vector<1x1x1xf32>
      %34 = vector.broadcast %33 : f32 to vector<1x1xf32>
      %35 = vector.shape_cast %34 : vector<1x1xf32> to vector<1x1xf32>
      %36 = vector.broadcast %35 : vector<1x1xf32> to vector<1x128xf32>
      %37 = arith.addf %13, %36 : vector<1x128xf32>
      %c0_15 = arith.constant 0 : index
      %c0_16 = arith.constant 0 : index
      %38 = vector.load %arg4[%c0_15, %c0_16] : memref<1x128xf32, #tpu.memory_space<vmem>>, vector<1x128xf32>
      tpu.vector_store %arg4[%c0_15, %c0_16], %37 {strides = array<i32>} : memref<1x128xf32, #tpu.memory_space<vmem>>, vector<1x128xf32>,
    } else {
    }
    %true = arith.constant true
    %10 = arith.xori %7, %true : i1
    %11 = arith.extui %10 : i1 to i32
    %cst_4 = arith.constant 1.000000e-16 : f32
    %c0_i32_5 = arith.constant 0 : i32
    %12 = arith.cmpi ne, %11, %c0_i32_5 : i32
    scf.if %12 {
      %c0 = arith.constant 0 : index
      %c0_6 = arith.constant 0 : index
      %13 = vector.load %arg4[%c0, %c0_6] : memref<1x128xf32, #tpu.memory_space<vmem>>, vector<1x128xf32>
      %c0_7 = arith.constant 0 : index
      %c0_8 = arith.constant 0 : index
      %14 = vector.load %arg2[%c0_7, %c0_8] : memref<32x128xf32, #tpu.memory_space<vmem>>, vector<32x128xf32>
      %c0_9 = arith.constant 0 : index
      %c0_10 = arith.constant 0 : index
      %15 = vector.load %arg3[%c0_9, %c0_10] : memref<32x128xf32, #tpu.memory_space<vmem>>, vector<32x128xf32>
      %16 = arith.mulf %14, %15 : vector<32x128xf32>
      %cst_11 = arith.constant dense<0.000000e+00> : vector<32xf32>
      %17 = vector.multi_reduction <add>, %16, %cst_11 [1] : vector<32x128xf32> to vector<32xf32>
      %18 = vector.shape_cast %17 : vector<32xf32> to vector<32x1xf32>
      %19 = arith.mulf %14, %14 : vector<32x128xf32>
      %cst_12 = arith.constant dense<0.000000e+00> : vector<32xf32>
      %20 = vector.multi_reduction <add>, %19, %cst_12 [1] : vector<32x128xf32> to vector<32xf32>
      %21 = vector.shape_cast %20 : vector<32xf32> to vector<32x1xf32>
      %22 = arith.mulf %15, %15 : vector<32x128xf32>
      %cst_13 = arith.constant dense<0.000000e+00> : vector<32xf32>
      %23 = vector.multi_reduction <add>, %22, %cst_13 [1] : vector<32x128xf32> to vector<32xf32>
      %24 = vector.shape_cast %23 : vector<32xf32> to vector<32x1xf32>
      %25 = arith.mulf %21, %24 : vector<32x1xf32>
      %26 = vector.broadcast %cst_4 : f32 to vector<32x1xf32>
      %27 = arith.maximumf %25, %26 : vector<32x1xf32>
      %28 = math.rsqrt %27 : vector<32x1xf32>
      %29 = arith.mulf %18, %28 : vector<32x1xf32>
      %30 = tpu.iota {dimensions = array<i32: 0>} : vector<32x1xi32>
      %c0_i32_14 = arith.constant 0 : i32
      %31 = arith.addi %5, %c0_i32_14 : i32
      %32 = vector.broadcast %31 : i32 to vector<32x1xi32>
      %33 = arith.addi %32, %30 : vector<32x1xi32>
      %c32_i32_15 = arith.constant 32 : i32
      %34 = vector.broadcast %c32_i32_15 : i32 to vector<32x1xi32>
      %35 = arith.cmpi slt, %33, %34 : vector<32x1xi32>
      %cst_16 = arith.constant 0.000000e+00 : f32
      %36 = vector.broadcast %cst_16 : f32 to vector<32x1xf32>
      %37 = arith.select %35, %29, %36 : vector<32x1xi1>, vector<32x1xf32>
      %38 = vector.shape_cast %37 : vector<32x1xf32> to vector<1x32x1xf32>
      %cst_17 = arith.constant dense<0.000000e+00> : vector<1xf32>
      %39 = vector.multi_reduction <add>, %38, %cst_17 [1, 2] : vector<1x32x1xf32> to vector<1xf32>
      %40 = vector.shape_cast %39 : vector<1xf32> to vector<1x1x1xf32>
      %41 = vector.extract %40[0, 0, 0] : f32 from vector<1x1x1xf32>
      %42 = vector.broadcast %41 : f32 to vector<1x1xf32>
      %43 = vector.shape_cast %42 : vector<1x1xf32> to vector<1x1xf32>
      %44 = vector.broadcast %43 : vector<1x1xf32> to vector<1x128xf32>
      %45 = arith.addf %13, %44 : vector<1x128xf32>
      %c0_18 = arith.constant 0 : index
      %c0_19 = arith.constant 0 : index
      %46 = vector.load %arg4[%c0_18, %c0_19] : memref<1x128xf32, #tpu.memory_space<vmem>>, vector<1x128xf32>
      tpu.vector_store %arg4[%c0_18, %c0_19], %45 {strides = array<i32>} : memref<1x128xf32, #tpu.memory_space<vmem>>, vector<1x128xf32>,
    } else {
    }
    return
  }
  func.func @transform_0(%arg0: i32, %arg1: i32) -> (i32, i32) {
    %c1_i32 = arith.constant 1 : i32
    %0 = arith.muli %arg0, %c1_i32 : i32
    %1 = arith.addi %0, %arg1 : i32
    %c0_i32 = arith.constant 0 : i32
    %2 = arith.minsi %1, %c0_i32 : i32
    %c0_i32_0 = arith.constant 0 : i32
    %c0_i32_1 = arith.constant 0 : i32
    return %2, %c0_i32_0 : i32, i32
  }
  func.func @transform_1(%arg0: i32, %arg1: i32) -> (i32, i32) {
    %c1_i32 = arith.constant 1 : i32
    %0 = arith.muli %arg0, %c1_i32 : i32
    %1 = arith.addi %0, %arg1 : i32
    %c0_i32 = arith.constant 0 : i32
    %2 = arith.minsi %1, %c0_i32 : i32
    %c0_i32_0 = arith.constant 0 : i32
    %c0_i32_1 = arith.constant 0 : i32
    return %2, %c0_i32_0 : i32, i32
  }
  func.func @transform_2(%arg0: i32, %arg1: i32) -> (i32, i32) {
    %c0_i32 = arith.constant 0 : i32
    %c0_i32_0 = arith.constant 0 : i32
    return %arg0, %c0_i32 : i32, i32
  }
}

</mosaic_0001>

<bundles_post_ra>
// kernel: tpu_custom_call.1
= control target key start
LH: loop header
LB: loop body
LE: loop exit
PB: predicated region body
PF: predicated region fallthrough
CT: control target
= control target key end

     0   :  { %7 = vsyncpa [#allocation3], 0  ;;  %s420_s0 = inlined_call_operand.hbm [shape: f32[32,128], index: 0, kind: input, shape index: {}]   ;;  %s421_s1 = inlined_call_operand.hbm [shape: f32[32,128], index: 1, kind: input, shape index: {}]   ;;  %s422_s2 = inlined_call_operand.hbm [shape: f32[1,128], index: 2, kind: output, shape index: {}]  }
   0x1   :  { %8 = vsyncpa [#allocation6], 0 }
   0x2   :  { %9 = vsyncpa [#allocation4], 0  ;;  %s363_s9 = smov [#allocation2]   ;;  %s291_s13 = scalar_lea.hbm %s420_s0, 512 }
   0x3   :  { %s21_s10 = sshll.u32 %s363_s9, 4  ;;  %p292_p0 = scmp.ne.s32.totalorder %s420_s0, %s291_s13  ;;  %s22_s10 = int_to_ptr.vmem [resolvable:$true] %s21_s10 }
   0x4   :  { %p295_p1 = scmp.lt.u32.totalorder %s291_s13, %s420_s0 }
   0x6   :  { %p297_p2 = pnand %p295_p1, %p292_p0 }
   0x8   :  { %300 = shalt.err (!%p297_p2)
}
   0x9   :  { %s301_s18 = scalar_lea.vmem %s22_s10, 512  ;;  %p306_p4 = scmp.lt.s32.totalorder %s22_s10, %s22_s10 }
   0xa   :  { %p302_p3 = scmp.ne.s32.totalorder %s22_s10, %s301_s18  ;;  %p307_p5 = scmp.lt.s32.totalorder %s301_s18, %s301_s18 }
   0xc   :  { %p308_p6 = por %p307_p5, %p306_p4 }
   0xe   :  { %p309_p7 = pnand %p308_p6, %p302_p3 }
  0x10   :  { %312 = shalt.err (!%p309_p7)
}
  0x11   :  { %s364_s19 = smov 128   ;;  %s365_s20 = smov 8  }
  0x12   :  { %27 = dma.hbm_to_vmem [thread:$0]  %s420_s0, 512, %s22_s10, [#allocation3], %s364_s19, %s364_s19, %s365_s20  }
  0x13   :  { %s366_s23 = smov [#allocation5]   ;;  %s313_s27 = scalar_lea.hbm %s421_s1, 512 }
  0x14   :  { %s39_s24 = sshll.u32 %s366_s23, 4  ;;  %p314_p8 = scmp.ne.s32.totalorder %s421_s1, %s313_s27  ;;  %s40_s24 = int_to_ptr.vmem [resolvable:$true] %s39_s24 }
  0x15   :  { %p317_p9 = scmp.lt.u32.totalorder %s313_s27, %s421_s1 }
  0x17   :  { %p319_p10 = pnand %p317_p9, %p314_p8 }
  0x19   :  { %322 = shalt.err (!%p319_p10)
}
  0x1a   :  { %s323_s4 = scalar_lea.vmem %s40_s24, 512  ;;  %p328_p12 = scmp.lt.s32.totalorder %s40_s24, %s40_s24 }
  0x1b   :  { %p324_p11 = scmp.ne.s32.totalorder %s40_s24, %s323_s4  ;;  %p329_p13 = scmp.lt.s32.totalorder %s323_s4, %s323_s4 }
  0x1d   :  { %p330_p0 = por %p329_p13, %p328_p12 }
  0x1f   :  { %p331_p1 = pnand %p330_p0, %p324_p11 }
  0x21   :  { %334 = shalt.err (!%p331_p1)
}
  0x22   :  { %45 = dma.hbm_to_vmem [thread:$0]  %s421_s1, 512, %s40_s24, [#allocation6], %s364_s19, %s364_s19, %s365_s20  }
  0x23   :  { %357 = dma.done.wait [#allocation3], 512  }
  0x24   :  { %358 = vsyncadd [#allocation3], 4294966784 }
  0x25   :  { %359 = dma.done.wait [#allocation6], 512  }
  0x26   :  { %360 = vsyncadd [#allocation6], 4294966784  ;;  %v77_v0 = vld [vmem:[#allocation5] sm:$0xff]  ;;  %v78_v2 = vld [vmem:[#allocation5 + $0x8] sm:$0xff]  ;;  %vm133_vm0 = vcmask 7168   ;;  %v367_v55 = vmov 0.0  }
  0x27   :  { %v73_v1 = vld [vmem:[#allocation2] sm:$0xff]  ;;  %v105_v3 = vmul.f32 %v77_v0, %v77_v0  ;;  %v74_v5 = vld [vmem:[#allocation2 + $0x8] sm:$0xff]  ;;  %v106_v6 = vmul.f32 %v78_v2, %v78_v2  ;;  %v79_v8 = vld [vmem:[#allocation5 + $0x10] sm:$0xff]  ;;  %64 = vst [vmem:[#allocation7] sm:$0x1] %v367_v55  ;;  %s368_s1 = smov [#allocation7]  }
  0x28   :  { %v93_v4 = vmul.f32 %v73_v1, %v73_v1  ;;  %v94_v7 = vmul.f32 %v74_v5, %v74_v5  ;;  %v75_v9 = vld [vmem:[#allocation2 + $0x10] sm:$0xff]  ;;  %v107_v10 = vmul.f32 %v79_v8, %v79_v8  ;;  %v80_v12 = vld [vmem:[#allocation5 + $0x18] sm:$0xff]  ;;  %v81_v16 = vmul.f32 %v77_v0, %v73_v1  ;;  %s261_s6 = sshll.u32 %s368_s1, 4  ;;  %s262_s6 = int_to_ptr.vmem [resolvable:$true] %s261_s6 }
  0x29   :  { %109 = vadd.xlane.f32.xlu1 %v105_v3  ;;  %v95_v11 = vmul.f32 %v75_v9, %v75_v9  ;;  %v76_v13 = vld [vmem:[#allocation2 + $0x18] sm:$0xff]  ;;  %v108_v14 = vmul.f32 %v80_v12, %v80_v12  ;;  %v82_v17 = vmul.f32 %v78_v2, %v74_v5  ;;  %v83_v18 = vmul.f32 %v79_v8, %v75_v9  ;;  %s335_s8 = scalar_lea.vmem %s262_s6, 16  ;;  %s339_s9 = scalar_lea.vmem %s262_s6, 32 }
  0x2a   :  { %97 = vadd.xlane.f32.xlu0 %v93_v4  ;;  %v96_v15 = vmul.f32 %v76_v13, %v76_v13  ;;  %v84_v19 = vmul.f32 %v80_v12, %v76_v13  ;;  %p336_p2 = scmp.ne.s32.totalorder %s262_s6, %s335_s8  ;;  %p340_p3 = scmp.lt.s32.totalorder %s262_s6, %s262_s6 }
  0x2b   :  { %p341_p4 = scmp.lt.s32.totalorder %s339_s9, %s335_s8 }
  0x2d   :  { %111 = vadd.xlane.f32.xlu1 %v106_v6  ;;  %p342_p5 = por %p341_p4, %p340_p3 }
  0x2e   :  { %99 = vadd.xlane.f32.xlu0 %v94_v7  ;;  %v72_v63 = vld [vmem:[#allocation7] sm:$0x1] }
  0x2f   :  { %p343_p6 = pnand %p342_p5, %p336_p2 }
  0x31   :  { %113 = vadd.xlane.f32.xlu1 %v107_v10 }
  0x32   :  { %101 = vadd.xlane.f32.xlu0 %v95_v11 }
  0x35   :  { %115 = vadd.xlane.f32.xlu1 %v108_v14 }
  0x36   :  { %103 = vadd.xlane.f32.xlu0 %v96_v15 }
  0x39   :  { %87 = vadd.xlane.f32.xlu1 %v82_v17 }
  0x3a   :  { %85 = vadd.xlane.f32.xlu0 %v81_v16 }
  0x3d   :  { %91 = vadd.xlane.f32.xlu1 %v84_v19 }
  0x3e   :  { %89 = vadd.xlane.f32.xlu0 %v83_v18 }
  0xb6   :  { %v110_v20 = vpop.xlane.xlu1 %109 }
  0xb7   :  { %v98_v21 = vpop.xlane.xlu0 %97 }
  0xb8   :  { %v117_v22 = vmul.f32 %v110_v20, %v98_v21 }
  0xba   :  { %v121_v23 = vmax.f32 %v117_v22, 1e-16  ;;  %v112_v24 = vpop.xlane.xlu1 %111 }
  0xbb   :  { %v100_v25 = vpop.xlane.xlu0 %99 }
  0xbc   :  { %v118_v26 = vmul.f32 %v112_v24, %v100_v25  ;;  %283 = vrsqrt.f32 %v121_v23 }
  0xbe   :  { %v122_v27 = vmax.f32 %v118_v26, 1e-16  ;;  %v114_v28 = vpop.xlane.xlu1 %113 }
  0xbf   :  { %v102_v29 = vpop.xlane.xlu0 %101 }
  0xc0   :  { %285 = vrsqrt.f32 %v122_v27  ;;  %v119_v30 = vmul.f32 %v114_v28, %v102_v29 }
  0xc2   :  { %v123_v31 = vmax.f32 %v119_v30, 1e-16  ;;  %v116_v32 = vpop.xlane.xlu1 %115 }
  0xc3   :  { %v104_v33 = vpop.xlane.xlu0 %103 }
  0xc4   :  { %287 = vrsqrt.f32 %v123_v31  ;;  %v120_v34 = vmul.f32 %v116_v32, %v104_v33 }
  0xc6   :  { %v124_v35 = vmax.f32 %v120_v34, 1e-16  ;;  %v88_v37 = vpop.xlane.xlu1 %87  ;;  %v284_v38 = vpop.eup %283 }
  0xc7   :  { %v86_v36 = vpop.xlane.xlu0 %85 }
  0xc8   :  { %289 = vrsqrt.f32 %v124_v35  ;;  %v129_v42 = vmul.f32 %v284_v38, %v86_v36 }
  0xca   :  { %v286_v39 = vpop.eup %285  ;;  %v92_v46 = vpop.xlane.xlu1 %91  ;;  %v134_v47 = vsel %vm133_vm0, %v129_v42, 0.0 }
  0xcb   :  { %v130_v40 = vmul.f32 %v286_v39, %v88_v37  ;;  %v90_v41 = vpop.xlane.xlu0 %89 }
  0xcd   :  { %v135_v44 = vsel %vm133_vm0, %v130_v40, 0.0 }
  0xce   :  { %v288_v43 = vpop.eup %287  ;;  %v136_v50 = vadd.f32 %v135_v44, %v134_v47 }
  0xcf   :  { %v131_v45 = vmul.f32 %v288_v43, %v90_v41 }
  0xd1   :  { %v137_v48 = vsel %vm133_vm0, %v131_v45, 0.0 }
  0xd2   :  { %v290_v49 = vpop.eup %289  ;;  %v138_v52 = vadd.f32 %v137_v48, %v136_v50 }
  0xd3   :  { %v132_v51 = vmul.f32 %v290_v49, %v92_v46 }
  0xd5   :  { %v139_v53 = vsel %vm133_vm0, %v132_v51, 0.0 }
  0xd6   :  { %v140_v54 = vadd.f32 %v139_v53, %v138_v52 }
  0xd8   :  { %141 = vadd.xlane.f32.xlu0 %v140_v54 }
 0x165   :  { %v142_v56 = vpop.xlane.xlu0 %141 }
 0x166   :  { %v143_v57 = vrot.slane %v142_v56, 4 }
 0x168   :  { %v144_v58 = vadd.f32 %v143_v57, %v142_v56 }
 0x16a   :  { %v145_v59 = vrot.slane %v144_v58, 2 }
 0x16c   :  { %v146_v60 = vadd.f32 %v145_v59, %v144_v58 }
 0x16e   :  { %v147_v61 = vrot.slane %v146_v60, 1 }
 0x170   :  { %v148_v62 = vadd.f32 %v147_v61, %v146_v60 }
 0x172   :  { %275 = vpush %v148_v62 }
 0x1a3   :  { %s276_s7 = spop %275 }
 0x1a4   :  { %v150_v0 = vstv %s276_s7 }
 0x1a5   :  { %v151_v1 = vadd.f32 %v150_v0, %v72_v63 }
 0x1a7   :  { %152 = vst [vmem:[#allocation7] sm:$0x1] %v151_v1 }
 0x1a8   :  { %346 = shalt.err (!%p343_p6)
}
 0x1a9   :  { %s347_s12 = scalar_lea.hbm %s422_s2, 16 }
 0x1aa   :  { %p348_p7 = scmp.ne.s32.totalorder %s422_s2, %s347_s12  ;;  %p351_p8 = scmp.lt.u32.totalorder %s347_s12, %s422_s2 }
 0x1ac   :  { %p353_p9 = pnand %p351_p8, %p348_p7 }
 0x1ae   :  { %356 = shalt.err (!%p353_p9)
}
 0x1af   :  { %264 = dma.vmem_to_hbm [thread:$0]  %s262_s6, 16, %s422_s2, [#allocation4]  }
 0x1b0   :  { %361 = dma.done.wait [#allocation4], 16  }
 0x1b1   :  { %362 = vsyncadd [#allocation4], 4294967280 }
 0x1b2   :  { %268 = vsyncpa [#allocation3], 1 }
 0x1b3   :  { %269 = vsyncpa [#allocation6], 1 }
 0x1b4   :  { %270 = vsyncpa [#allocation4], 1 }

</bundles_post_ra>
